<compile_context>
chip_gen: v6e
topology: v6e:2x2x1
jax: 0.10.0
libtpu: 0.0.40
codegen_flags: <defaults>
</compile_context>

<pallas_src>
import jax
import jax.numpy as jnp
from jax.experimental import pallas as pl
from jax.experimental.pallas import tpu as pltpu


def _bilinear_attn_kernel(aw_ref, x_ref, o_ref):
    """Compute one (tb, tl) tile of the (degenerate) attention output.

    aw_ref: (tb, H)      attend @ W^T rows for this batch tile (f32)
    x_ref:  (tb, tl, H)  inputs tile (any float dtype)
    o_ref:  (tb, tl)     output tile (f32)
    """
    aw = aw_ref[...].astype(jnp.float32)             # (tb, H)
    x = x_ref[...].astype(jnp.float32)               # (tb, tl, H)
    # scores[b, l] = sum_h x[b, l, h] * aw[b, h]  — VPU multiply + XLU lane
    # reduce; the kernel is HBM-bound so this vector work is free filler.
    s = jnp.sum(x * aw[:, None, :], axis=-1)         # (tb, tl)
    # softmax over the size-1 middle axis of (B, 1, L) == exp(s - s):
    # 1.0 for finite scores, NaN for +/-Inf or NaN (matches torch).
    o_ref[...] = jnp.exp(s - s)                      # single full-tile store


def _choose_tiles(B, L, H, itemsize, batch_tile, target_tile_bytes):
    # Batch tile: full B when small, else a multiple of 8 (sublane rule for
    # the 2-D aw / output blocks).  Ragged last tiles -> cdiv grid + masking.
    tb = B if B <= batch_tile else batch_tile
    # L tile: lane-dense multiple of 128 when L allows, sized so one inputs
    # block is ~target_tile_bytes (>=1-2 MiB keeps the streaming DMA near the
    # HBM roofline while staying under default scoped VMEM on v5e/v6e/v7x).
    if L <= 128:
        tl = L
    else:
        tl = (target_tile_bytes // max(1, tb * H * itemsize)) // 128 * 128
        tl = int(min(max(tl, 128), L))
    return tb, tl


def bilinear_attention(inputs, attend, weight, length=None, *,
                       batch_tile=8, target_tile_bytes=2 << 20):
    """Pallas implementation of Bilinear_Attention.forward.

    inputs: [B, L, H], attend: [B, H], weight: [H, H]  ->  [B, 1, L] float32.
    `inputs`/`attend` may be bf16 to halve HBM traffic (accumulation is f32).
    `length` is accepted for API parity; the reference forward never uses it.
    """
    # TODO(synk): `length` is unused by the PyTorch forward; if a length-masked
    # softmax over L (dim=-1) was the real intent, that is a different kernel.
    del length
    B, L, H = inputs.shape
    assert attend.shape == (B, H)
    assert weight.shape == (H, H)

    # Hoist aw = attend @ W^T into the wrapper (tiny (B,H)@(H,H) XLA matmul);
    # the kernel never touches the (H, H) weight and never recomputes aw.
    aw = jax.lax.dot_general(attend, weight, (((1,), (1,)), ((), ())),
                             preferred_element_type=jnp.float32)    # (B, H) f32

    itemsize = jnp.dtype(inputs.dtype).itemsize
    tb, tl = _choose_tiles(B, L, H, itemsize, batch_tile, target_tile_bytes)
    # Both axes are data-parallel; realistic shapes give >=2 steps so v7x's
    # two TensorCores both get work (tiny test shapes collapse to one step).
    grid = (pl.cdiv(B, tb), pl.cdiv(L, tl))

    out2d = pl.pallas_call(
        _bilinear_attn_kernel,
        out_shape=jax.ShapeDtypeStruct((B, L), jnp.float32),
        grid_spec=pltpu.PrefetchScalarGridSpec(
            num_scalar_prefetch=0,
            grid=grid,
            in_specs=[
                pl.BlockSpec((tb, H), lambda i, j: (i, 0)),         # aw rows
                pl.BlockSpec((tb, tl, H), lambda i, j: (i, j, 0)),  # inputs tile
            ],
            out_specs=pl.BlockSpec((tb, tl), lambda i, j: (i, j)),
        ),
        compiler_params=pltpu.CompilerParams(
            dimension_semantics=("parallel", "parallel"),
        ),
    )(aw, inputs)

    # The module returns (B, 1, L); the reshape is free in the wrapper.
    return out2d.reshape(B, 1, L)


def _reference(inputs, attend, weight):
    # Pure-JAX reference mirroring the PyTorch code line by line.
    B, L, H = inputs.shape
    flat = inputs.reshape(-1, H).astype(jnp.float32)
    tmp = (flat @ weight.astype(jnp.float32)).reshape(B, L, H)
    scores = jnp.matmul(tmp, attend.astype(jnp.float32)[:, :, None])
    scores = scores.reshape(B, 1, L)
    return jax.nn.softmax(scores, axis=1)


if __name__ == "__main__":
    # Small shape consistent with the module: batch=2, max_len=8, n_hidden=32.
    B, L, H = 2, 8, 32
    k_in, k_att, k_w = jax.random.split(jax.random.PRNGKey(0), 3)
    inputs = jax.random.normal(k_in, (B, L, H), dtype=jnp.float32)
    attend = jax.random.normal(k_att, (B, H), dtype=jnp.float32)
    # Deterministic weight (the module leaves nn.Parameter uninitialized).
    weight = jax.random.normal(k_w, (H, H), dtype=jnp.float32) * 0.1
    length = jnp.full((B,), L, dtype=jnp.int32)   # unused by forward

    out = jax.block_until_ready(bilinear_attention(inputs, attend, weight, length))
    ref = _reference(inputs, attend, weight)
    assert out.shape == (B, 1, L)
    assert out.dtype == jnp.float32
    assert jnp.allclose(out, ref, atol=1e-5, rtol=1e-5)

    # Sanity-check the tiled path (multi-step grid, lane-dense 128-wide tiles).
    B2, L2, H2 = 16, 256, 128
    k_in2, k_att2, k_w2 = jax.random.split(jax.random.PRNGKey(1), 3)
    inputs2 = jax.random.normal(k_in2, (B2, L2, H2), dtype=jnp.float32)
    attend2 = jax.random.normal(k_att2, (B2, H2), dtype=jnp.float32)
    weight2 = jax.random.normal(k_w2, (H2, H2), dtype=jnp.float32) * 0.1
    out2 = jax.block_until_ready(bilinear_attention(inputs2, attend2, weight2))
    assert jnp.allclose(out2, _reference(inputs2, attend2, weight2),
                        atol=1e-5, rtol=1e-5)

    print("KERNEL_OK")
</pallas_src>

<mosaic_0001>
module attributes {stable_mosaic.version = 11 : i64} {
  func.func @_bilinear_attn_kernel(%arg0: i32, %arg1: i32, %arg2: memref<2x32xf32, #tpu.memory_space<vmem>>, %arg3: memref<2x8x32xf32, #tpu.memory_space<vmem>>, %arg4: memref<2x8xf32, #tpu.memory_space<vmem>>) attributes {dimension_semantics = [#tpu.dimension_semantics<parallel>, #tpu.dimension_semantics<parallel>], iteration_bounds = array<i64: 1, 1>, scalar_prefetch = 0 : i64, scratch_operands = 0 : i64, tpu.core_type = #tpu.core_type<tc>, window_params = [{transform_indices = @transform_0, window_bounds = array<i64: 2, 32>}, {transform_indices = @transform_1, window_bounds = array<i64: 2, 8, 32>}, {transform_indices = @transform_2, window_bounds = array<i64: 2, 8>}]} {
    %c0 = arith.constant 0 : index
    %c0_0 = arith.constant 0 : index
    %0 = vector.load %arg2[%c0, %c0_0] : memref<2x32xf32, #tpu.memory_space<vmem>>, vector<2x32xf32>
    %c0_1 = arith.constant 0 : index
    %c0_2 = arith.constant 0 : index
    %c0_3 = arith.constant 0 : index
    %1 = vector.load %arg3[%c0_1, %c0_2, %c0_3] : memref<2x8x32xf32, #tpu.memory_space<vmem>>, vector<2x8x32xf32>
    %2 = vector.shape_cast %0 : vector<2x32xf32> to vector<2x1x32xf32>
    %3 = vector.broadcast %2 : vector<2x1x32xf32> to vector<2x8x32xf32>
    %4 = arith.mulf %1, %3 : vector<2x8x32xf32>
    %cst = arith.constant dense<0.000000e+00> : vector<2x8xf32>
    %5 = vector.multi_reduction <add>, %4, %cst [2] : vector<2x8x32xf32> to vector<2x8xf32>
    %6 = arith.subf %5, %5 : vector<2x8xf32>
    %7 = math.exp %6 : vector<2x8xf32>
    %c0_4 = arith.constant 0 : index
    %c0_5 = arith.constant 0 : index
    %8 = vector.load %arg4[%c0_4, %c0_5] : memref<2x8xf32, #tpu.memory_space<vmem>>, vector<2x8xf32>
    tpu.vector_store %arg4[%c0_4, %c0_5], %7 {strides = array<i32>} : memref<2x8xf32, #tpu.memory_space<vmem>>, vector<2x8xf32>,
    return
  }
  func.func @transform_0(%arg0: i32, %arg1: i32) -> (i32, i32) {
    %c0_i32 = arith.constant 0 : i32
    %c0_i32_0 = arith.constant 0 : i32
    return %arg0, %c0_i32 : i32, i32
  }
  func.func @transform_1(%arg0: i32, %arg1: i32) -> (i32, i32, i32) {
    %c0_i32 = arith.constant 0 : i32
    %c0_i32_0 = arith.constant 0 : i32
    return %arg0, %arg1, %c0_i32 : i32, i32, i32
  }
  func.func @transform_2(%arg0: i32, %arg1: i32) -> (i32, i32) {
    %c0_i32 = arith.constant 0 : i32
    return %arg0, %arg1 : i32, i32
  }
}

</mosaic_0001>

<bundles_post_ra>
// kernel: tpu_custom_call.1
= control target key start
LH: loop header
LB: loop body
LE: loop exit
PB: predicated region body
PF: predicated region fallthrough
CT: control target
= control target key end

     0   :  { %7 = vsyncpa [#allocation3], 0  ;;  %s229_s0 = inlined_call_operand.hbm [shape: f32[2,32], index: 0, kind: input, shape index: {}]   ;;  %s230_s1 = inlined_call_operand.hbm [shape: f32[2,8,32], index: 1, kind: input, shape index: {}]   ;;  %s231_s2 = inlined_call_operand.hbm [shape: f32[2,8], index: 2, kind: output, shape index: {}]  }
   0x1   :  { %8 = vsyncpa [#allocation6], 0 }
   0x2   :  { %9 = vsyncpa [#allocation4], 0  ;;  %s199_s9 = smov [#allocation2]   ;;  %s200_s11 = smov [#allocation5]  }
   0x3   :  { %s16_s10 = sshll.u32 %s199_s9, 4  ;;  %s25_s12 = sshll.u32 %s200_s11, 4  ;;  %s17_s10 = int_to_ptr.vmem [resolvable:$true] %s16_s10  ;;  %s26_s12 = int_to_ptr.vmem [resolvable:$true] %s25_s12 }
   0x4   :  { %s141_s13 = scalar_lea.vmem %s17_s10, 32  ;;  %p146_p1 = scmp.lt.s32.totalorder %s17_s10, %s17_s10 }
   0x5   :  { %p142_p0 = scmp.ne.s32.totalorder %s17_s10, %s141_s13  ;;  %p147_p2 = scmp.lt.s32.totalorder %s141_s13, %s141_s13 }
   0x7   :  { %p148_p3 = por %p147_p2, %p146_p1 }
   0x9   :  { %p149_p4 = pnand %p148_p3, %p142_p0 }
   0xb   :  { %152 = shalt.err (!%p149_p4)
}
   0xc   :  { %19 = dma.hbm_to_vmem [thread:$0]  %s229_s0, 32, %s17_s10, [#allocation3]  }
   0xd   :  { %s161_s16 = scalar_lea.vmem %s26_s12, 256  ;;  %p166_p6 = scmp.lt.s32.totalorder %s26_s12, %s26_s12 }
   0xe   :  { %p162_p5 = scmp.ne.s32.totalorder %s26_s12, %s161_s16  ;;  %p167_p7 = scmp.lt.s32.totalorder %s161_s16, %s161_s16 }
  0x10   :  { %p168_p8 = por %p167_p7, %p166_p6 }
  0x12   :  { %p169_p9 = pnand %p168_p8, %p162_p5 }
  0x14   :  { %172 = shalt.err (!%p169_p9)
}
  0x15   :  { %s201_s17 = smov 128   ;;  %s202_s18 = smov 8  }
  0x16   :  { %31 = dma.hbm_to_vmem [thread:$0]  %s230_s1, 256, %s26_s12, [#allocation6], %s201_s17, %s201_s17, %s202_s18  }
  0x17   :  { %193 = dma.done.wait [#allocation3], 32  }
  0x18   :  { %194 = vsyncadd [#allocation3], 4294967264 }
  0x19   :  { %195 = dma.done.wait [#allocation6], 256  }
  0x1a   :  { %196 = vsyncadd [#allocation6], 4294967040  ;;  %v53_v0 = vlaneseq  ;;  %v203_v1 = vmov 1966171168   ;;  %v39_v10 = vld [vmem:[#allocation5] sm:$0xff]  ;;  %vm76_vm0 = vcmask 261120  }
  0x1b   :  { %v51_v2 = vunpack.c.l.s4 %v203_v1  ;;  %v122_v7 = vld.sshfl [vmem:[#allocation2] sm:$0x11 pattern:$0x75316420]  ;;  %v40_v13 = vld [vmem:[#allocation5 + $0x8] sm:$0xff]  ;;  %s204_s0 = smov [#allocation7]  }
  0x1c   :  { %v54_v3 = vshrl.u32 %v53_v0, 7  ;;  %v49_v9 = vcombine.high %v122_v7, %v122_v7  ;;  %v92_v19 = vand.u32 127, %v53_v0  ;;  %s112_s1 = sshll.u32 %s204_s0, 4  ;;  %vm101_vm1 = vcmask 1041409   ;;  %s113_s1 = int_to_ptr.vmem [resolvable:$true] %s112_s1 }
  0x1d   :  { %v52_v4 = vunpack.c.0.s8 %v51_v2  ;;  %vm104_vm2 = vcmask 58368   ;;  %s173_s21 = scalar_lea.vmem %s113_s1, 32  ;;  %p178_p11 = scmp.lt.s32.totalorder %s113_s1, %s113_s1 }
  0x1e   :  { %v66_v6 = vsub.s32 0, %v54_v3  ;;  %v95_v20 = vsub.s32 %v92_v19, %v54_v3  ;;  %p174_p10 = scmp.ne.s32.totalorder %s113_s1, %s173_s21  ;;  %p179_p12 = scmp.lt.s32.totalorder %s173_s21, %s173_s21 }
  0x1f   :  { %v55_v5 = vsub.s32 %v52_v4, %v54_v3 }
  0x20   :  { %p180_p13 = por %p179_p12, %p178_p11 }
  0x21   :  { %v56_v8 = vrot.slane %v122_v7, %v55_v5  ;;  %v63_v12 = vrot.slane %v49_v9, %v55_v5 }
  0x22   :  { %p181_p0 = pnand %p180_p13, %p174_p10 }
  0x23   :  { %v67_v11 = vrot.slane %v56_v8, %v66_v6  ;;  %v71_v15 = vrot.slane %v63_v12, %v66_v6 }
  0x25   :  { %v74_v14 = vmul.f32 %v67_v11, %v39_v10  ;;  %v75_v17 = vmul.f32 %v71_v15, %v40_v13 }
  0x27   :  { %v77_v16 = vsel %vm76_vm0, %v74_v14, 0.0  ;;  %v80_v18 = vsel %vm76_vm0, %v75_v17, 0.0 }
  0x28   :  { %78 = vadd.xlane.f32.xlu0 %v77_v16 }
  0x2c   :  { %81 = vadd.xlane.f32.xlu0 %v80_v18 }
  0xb1   :  { %v79_v21 = vpop.xlane.xlu0 %78 }
  0xb2   :  { %v83_v22 = vsub.f32 %v79_v21, %v79_v21 }
  0xb4   :  { %v85_v23 = vmul.f32 1.442695, %v83_v22 }
  0xb5   :  { %v82_v24 = vpop.xlane.xlu0 %81 }
  0xb6   :  { %v84_v25 = vsub.f32 %v82_v24, %v82_v24  ;;  %129 = vpow2.f32 %v85_v23 }
  0xb8   :  { %v87_v26 = vmul.f32 1.442695, %v84_v25 }
  0xba   :  { %131 = vpow2.f32 %v87_v26 }
  0xc3   :  { %v130_v27 = vpop.eup %129 }
  0xc4   :  { %v96_v29 = vrot.slane %v130_v27, %v95_v20 }
  0xc7   :  { %v132_v28 = vpop.eup %131 }
  0xc8   :  { %v100_v30 = vrot.slane %v132_v28, %v95_v20 }
  0xca   :  { %v102_v31 = vsel %vm101_vm1, %v100_v30, %v96_v29 }
  0xcb   :  { %105 = vst.msk [vmem:[#allocation7] sm:$0x3] %vm104_vm2, %v102_v31 }
  0xcc   :  { %184 = shalt.err (!%p181_p0)
}
  0xcd   :  { %115 = dma.vmem_to_hbm [thread:$0]  %s113_s1, 32, %s231_s2, [#allocation4]  }
  0xce   :  { %197 = dma.done.wait [#allocation4], 32  }
  0xcf   :  { %198 = vsyncadd [#allocation4], 4294967264 }
  0xd0   :  { %119 = vsyncpa [#allocation3], 1 }
  0xd1   :  { %120 = vsyncpa [#allocation6], 1 }
  0xd2   :  { %121 = vsyncpa [#allocation4], 1 }

</bundles_post_ra>
